<compile_context>
chip_gen: v7x
topology: tpu7x:2x2x1
jax: 0.10.0
libtpu: 0.0.40
codegen_flags: <defaults>
</compile_context>

<pallas_src>
import functools

import jax
import jax.numpy as jnp
import numpy as np
from jax.experimental import pallas as pl
from jax.experimental.pallas import tpu as pltpu


def _rfe_kernel(W, L, shift_dtype,
                mask_ref, x_ref, w1, b1, w2, b2, w3, b3, w4, b4,
                o_ref, stacked_ref):
    x = x_ref[0]                                     # (C, L) float32
    C = x.shape[0]

    def conv1x1(w_ref, act_bf16, b_ref):
        # (Cout, Cin) @ (Cin, L) on the MXU (f32 accumulate);
        # bias add + ReLU on the VPU in f32.
        y = jnp.dot(w_ref[...], act_bf16, preferred_element_type=jnp.float32)
        return jnp.maximum(y + b_ref[...], 0.0)

    # ---- stage 1: the four branch-entry 1x1 convs, fused into one matmul.
    t = conv1x1(w1, x.astype(jnp.bfloat16), b1)      # (C, L) f32
    ts = t.astype(shift_dtype)   # bf16 shift path on v6e/v7x, f32 on v5e

    # ---- build the stage-2 operand directly in bf16 VMEM scratch.
    # 10 slots = 5 W-shifts (-2..2) then 5 H-shifts (-2..2) of the stage-1
    # output.  roll result r[p] = ts[p + shift] except at wrap positions,
    # which are exactly the lanes zeroed by the (host-precomputed, per-image)
    # edge masks — this also prevents leakage across image boundaries when
    # multiple images share the lane axis.  Stores are per-slot bf16 writes
    # at C-row-aligned (16-row for C=16 -> bf16-tile-aligned) offsets.
    lane_shifts = [-2, -1, 0, 1, 2] + [d * W for d in (-2, -1, 0, 1, 2)]
    for s, shift in enumerate(lane_shifts):
        if shift == 0:
            piece = ts
        else:
            piece = pltpu.roll(ts, (-shift) % L, axis=1) * mask_ref[s:s + 1, :]
        stacked_ref[s * C:(s + 1) * C, :] = piece.astype(jnp.bfloat16)

    # ---- stage 2: every directional conv as a single lane-dense matmul.
    t = conv1x1(w2, stacked_ref[...], b2)            # (C, L)
    # ---- stage 3: the four branch-exit 1x1 convs (block-diagonal weight).
    t = conv1x1(w3, t.astype(jnp.bfloat16), b3)      # (C, L)
    # ---- final 1x1 conv (with ReLU, as in the module) + residual add.
    y = conv1x1(w4, t.astype(jnp.bfloat16), b4)      # (C, L)
    o_ref[0] = x + y


def _pick_shift_dtype():
    # bf16 VPU/XLU is native on v6e/v7x; older chips (v5e etc.) would emulate
    # bf16 element-wise ops, so keep the shift/mask path in f32 there.
    try:
        kind = jax.devices()[0].device_kind.lower()
    except Exception:
        kind = ""
    return jnp.bfloat16 if ("v6" in kind or "v7" in kind) else jnp.float32


def _build_edge_masks(H, W, Bt):
    """(10, Bt*H*W) per-image edge-validity masks, one row per shift slot."""
    HW = H * W
    pos = np.arange(Bt * HW)
    col = (pos % HW) % W
    row = (pos % HW) // W
    m = np.ones((10, Bt * HW), np.float32)
    for s, d in enumerate((-2, -1, 0, 1, 2)):
        m[s] = (col + d >= 0) & (col + d < W)        # W-shift slots
        m[5 + s] = (row + d >= 0) & (row + d < H)    # H-shift slots
    return m


def receptive_field_enrichment(x, packed_params, target_lanes=2048):
    """x: (B, C, H, W) float32 (NCHW, as in the PyTorch module)."""
    B, C, H, W = x.shape
    HW = H * W

    # Images per grid step: fold whole images into the lane axis so each step
    # sees a wide (C, Bt*HW) slab (amortizes per-step overhead and weight
    # re-touching, fills the MXU N dim, gives unmasked full-lane stores).
    # Keep at least 2 grid steps when B >= 2 so v7x's two TCs both get work.
    cap = max(1, target_lanes // HW)
    if B >= 2:
        cap = min(cap, B // 2)
    Bt = max(d for d in range(1, B + 1) if B % d == 0 and d <= cap)
    G = B // Bt
    L = Bt * HW

    shift_dtype = _pick_shift_dtype()
    masks = jnp.asarray(_build_edge_masks(H, W, Bt), shift_dtype)

    # (B, C, H, W) -> (G, C, Bt*HW): channels-major, Bt images concatenated
    # along the lane axis.  Layout plumbing stays in the XLA wrapper.
    x_blk = x.reshape(G, Bt, C, HW).transpose(0, 2, 1, 3).reshape(G, C, L)

    def const_spec(a):
        nd = a.ndim
        return pl.BlockSpec(a.shape, lambda g, _nd=nd: (0,) * _nd)

    in_specs = [const_spec(masks),
                pl.BlockSpec((1, C, L), lambda g: (g, 0, 0))]
    in_specs += [const_spec(p) for p in packed_params]
    out_specs = pl.BlockSpec((1, C, L), lambda g: (g, 0, 0))

    out = pl.pallas_call(
        functools.partial(_rfe_kernel, W, L, shift_dtype),
        out_shape=jax.ShapeDtypeStruct((G, C, L), x.dtype),
        grid=(G,),
        in_specs=in_specs,
        out_specs=out_specs,
        scratch_shapes=[pltpu.VMEM((10 * C, L), jnp.bfloat16)],
        compiler_params=pltpu.CompilerParams(
            dimension_semantics=(pltpu.PARALLEL,)),
    )(masks, x_blk, *packed_params)

    return (out.reshape(G, C, Bt, HW)
               .transpose(0, 2, 1, 3)
               .reshape(B, C, H, W))


def init_params(key, C):
    """Deterministic synthetic weights, same shapes as the module's convs.

    Stored per-branch as: 1x1 conv -> (C_in, C_out); directional conv ->
    (K, C_in, C_out); bias -> (1, C_out).
    """
    Cm = C // 4
    keys = iter(jax.random.split(key, 64))

    def w(shape):
        return jax.random.normal(next(keys), shape, jnp.float32) * 0.1

    params = []
    for K, _d in [(5, "w"), (5, "h"), (3, "w"), (3, "h")]:
        params += [
            w((C, Cm)), w((1, Cm)),        # 1x1 conv
            w((K, Cm, Cm)), w((1, Cm)),    # directional conv
            w((Cm, Cm)), w((1, Cm)),       # 1x1 conv
        ]
    params += [w((C, C)), w((1, C))]       # final 1x1 conv
    return params


def pack_params(params, C):
    """Fold the 26 per-branch tensors into 4 packed weights + 4 biases.

    Weights are transposed to (C_out, C_in) layout (kernel computes W @ X),
    the four branches are concatenated/block-diagonalized, and the 3-tap
    directional kernels are zero-padded to the shared 5-tap slot layout.
    Weights are stored in bf16 (MXU operands), biases as (C, 1) f32.
    """
    params = [np.asarray(p, np.float32) for p in params]
    Cm = C // 4
    branch_defs = [(5, "w"), (5, "h"), (3, "w"), (3, "h")]

    w1 = np.zeros((C, C), np.float32)
    b1 = np.zeros((C, 1), np.float32)
    w2 = np.zeros((C, 10 * C), np.float32)   # 10 slots: 5 W-shifts, 5 H-shifts
    b2 = np.zeros((C, 1), np.float32)
    w3 = np.zeros((C, C), np.float32)
    b3 = np.zeros((C, 1), np.float32)

    idx = 0
    for b, (K, d) in enumerate(branch_defs):
        bw1, bb1, bw2, bb2, bw3, bb3 = params[idx:idx + 6]
        idx += 6
        rows = slice(b * Cm, (b + 1) * Cm)

        w1[rows, :] = bw1.T                       # (Cm_out, C_in)
        b1[rows, 0] = bb1.reshape(Cm)

        base = 0 if d == "w" else 5               # W-shift slots vs H-shift slots
        for j in range(K):                        # tap j <-> spatial offset j - K//2
            slot = base + (j - K // 2) + 2
            col0 = slot * C + b * Cm
            w2[rows, col0:col0 + Cm] = bw2[j].T   # (Cm_out, Cm_in)
        b2[rows, 0] = bb2.reshape(Cm)

        w3[rows, rows] = bw3.T                    # block diagonal
        b3[rows, 0] = bb3.reshape(Cm)

    fw, fb = params[idx:idx + 2]
    w4 = fw.T                                     # concat order [x1,x2,x3,x4]
    b4 = fb.reshape(C, 1)

    return [
        jnp.asarray(w1, jnp.bfloat16), jnp.asarray(b1, jnp.float32),
        jnp.asarray(w2, jnp.bfloat16), jnp.asarray(b2, jnp.float32),
        jnp.asarray(w3, jnp.bfloat16), jnp.asarray(b3, jnp.float32),
        jnp.asarray(w4, jnp.bfloat16), jnp.asarray(b4, jnp.float32),
    ]


def ref_forward(x_nhwc, params):
    """Pure-JAX reference (lax.conv, NHWC) on the original per-branch params."""
    def conv1x1(t, wmat, b):
        y = jnp.einsum("bhwi,io->bhwo", t, wmat) + b.reshape(1, 1, 1, -1)
        return jax.nn.relu(y)

    outs = []
    idx = 0
    for K, d in [(5, "w"), (5, "h"), (3, "w"), (3, "h")]:
        w1, b1, w2, b2, w3, b3 = params[idx:idx + 6]
        idx += 6
        t = conv1x1(x_nhwc, w1, b1)
        if d == "w":
            rhs = w2[None]            # (1, K, Ci, Co)
            pad = ((0, 0), (K // 2, K // 2))
        else:
            rhs = w2[:, None]         # (K, 1, Ci, Co)
            pad = ((K // 2, K // 2), (0, 0))
        t = jax.lax.conv_general_dilated(
            t, rhs, (1, 1), pad,
            dimension_numbers=("NHWC", "HWIO", "NHWC"))
        t = jax.nn.relu(t + b2.reshape(1, 1, 1, -1))
        t = conv1x1(t, w3, b3)
        outs.append(t)
    total = jnp.concatenate(outs, axis=-1)
    fw, fb = params[idx:idx + 2]
    return x_nhwc + conv1x1(total, fw, fb)


if __name__ == "__main__":
    B, C, H, W = 2, 16, 16, 16      # in_channels=16 -> branch channels = 4
    key = jax.random.PRNGKey(0)
    kx, kp = jax.random.split(key)
    x = jax.random.normal(kx, (B, C, H, W), jnp.float32)     # NCHW like PyTorch

    params = init_params(kp, C)
    packed = pack_params(params, C)

    out = jax.block_until_ready(receptive_field_enrichment(x, packed))

    x_nhwc = jnp.transpose(x, (0, 2, 3, 1))
    ref = jnp.transpose(ref_forward(x_nhwc, params), (0, 3, 1, 2))
    ref = jax.block_until_ready(ref)

    if not np.allclose(np.asarray(out), np.asarray(ref), rtol=2e-2, atol=2e-2):
        err = float(np.max(np.abs(np.asarray(out) - np.asarray(ref))))
        raise AssertionError(
            f"Pallas kernel output mismatch vs JAX reference (max abs err {err})")

    print("KERNEL_OK")
</pallas_src>

<mosaic_0001>
module attributes {stable_mosaic.version = 11 : i64} {
  func.func @_rfe_kernel(%arg0: i32, %arg1: memref<10x256xf32, #tpu.memory_space<vmem>>, %arg2: memref<1x16x256xf32, #tpu.memory_space<vmem>>, %arg3: memref<16x16xbf16, #tpu.memory_space<vmem>>, %arg4: memref<16x1xf32, #tpu.memory_space<vmem>>, %arg5: memref<16x160xbf16, #tpu.memory_space<vmem>>, %arg6: memref<16x1xf32, #tpu.memory_space<vmem>>, %arg7: memref<16x16xbf16, #tpu.memory_space<vmem>>, %arg8: memref<16x1xf32, #tpu.memory_space<vmem>>, %arg9: memref<16x16xbf16, #tpu.memory_space<vmem>>, %arg10: memref<16x1xf32, #tpu.memory_space<vmem>>, %arg11: memref<1x16x256xf32, #tpu.memory_space<vmem>>, %arg12: memref<160x256xbf16, #tpu.memory_space<vmem>>) attributes {dimension_semantics = [#tpu.dimension_semantics<parallel>], iteration_bounds = array<i64: 2>, scalar_prefetch = 0 : i64, scratch_operands = 1 : i64, tpu.core_type = #tpu.core_type<tc>, window_params = [{pipeline_mode = #tpu.pipeline_mode<synchronous>, transform_indices = @transform_0, window_bounds = array<i64: 10, 256>}, {transform_indices = @transform_1, window_bounds = array<i64: 1, 16, 256>}, {pipeline_mode = #tpu.pipeline_mode<synchronous>, transform_indices = @transform_2, window_bounds = array<i64: 16, 16>}, {pipeline_mode = #tpu.pipeline_mode<synchronous>, transform_indices = @transform_3, window_bounds = array<i64: 16, 1>}, {pipeline_mode = #tpu.pipeline_mode<synchronous>, transform_indices = @transform_4, window_bounds = array<i64: 16, 160>}, {pipeline_mode = #tpu.pipeline_mode<synchronous>, transform_indices = @transform_5, window_bounds = array<i64: 16, 1>}, {pipeline_mode = #tpu.pipeline_mode<synchronous>, transform_indices = @transform_6, window_bounds = array<i64: 16, 16>}, {pipeline_mode = #tpu.pipeline_mode<synchronous>, transform_indices = @transform_7, window_bounds = array<i64: 16, 1>}, {pipeline_mode = #tpu.pipeline_mode<synchronous>, transform_indices = @transform_8, window_bounds = array<i64: 16, 16>}, {pipeline_mode = #tpu.pipeline_mode<synchronous>, transform_indices = @transform_9, window_bounds = array<i64: 16, 1>}, {transform_indices = @transform_10, window_bounds = array<i64: 1, 16, 256>}]} {
    %c0 = arith.constant 0 : index
    %c0_0 = arith.constant 0 : index
    %c0_1 = arith.constant 0 : index
    %0 = vector.load %arg2[%c0, %c0_0, %c0_1] : memref<1x16x256xf32, #tpu.memory_space<vmem>>, vector<1x16x256xf32>
    %1 = vector.shape_cast %0 : vector<1x16x256xf32> to vector<16x256xf32>
    %2 = arith.truncf %1 : vector<16x256xf32> to vector<16x256xbf16>
    %c0_2 = arith.constant 0 : index
    %c0_3 = arith.constant 0 : index
    %3 = vector.load %arg3[%c0_2, %c0_3] : memref<16x16xbf16, #tpu.memory_space<vmem>>, vector<16x16xbf16>
    %cst = arith.constant dense<0.000000e+00> : vector<16x256xf32>
    %4 = tpu.matmul %3, %2, %cst {dimension_numbers = #tpu.dot_dimension_numbers<[1], [0], [0], [1], [0, 0, 1, 1], [], []>} : vector<16x16xbf16>, vector<16x256xbf16>, vector<16x256xf32> -> vector<16x256xf32>
    %c0_4 = arith.constant 0 : index
    %c0_5 = arith.constant 0 : index
    %5 = vector.load %arg4[%c0_4, %c0_5] : memref<16x1xf32, #tpu.memory_space<vmem>>, vector<16x1xf32>
    %6 = vector.broadcast %5 : vector<16x1xf32> to vector<16x256xf32>
    %7 = arith.addf %4, %6 : vector<16x256xf32>
    %cst_6 = arith.constant 0.000000e+00 : f32
    %8 = vector.broadcast %cst_6 : f32 to vector<16x256xf32>
    %9 = arith.maximumf %7, %8 : vector<16x256xf32>
    %c2_i32 = arith.constant 2 : i32
    %10 = tpu.dynamic_rotate %9 by %c2_i32 dim 1 : vector<16x256xf32>, i32 -> vector<16x256xf32>
    %c0_7 = arith.constant 0 : index
    %c0_8 = arith.constant 0 : index
    %11 = vector.load %arg1[%c0_7, %c0_8] : memref<10x256xf32, #tpu.memory_space<vmem>>, vector<1x256xf32>
    %12 = vector.broadcast %11 : vector<1x256xf32> to vector<16x256xf32>
    %13 = arith.mulf %10, %12 : vector<16x256xf32>
    %14 = arith.truncf %13 : vector<16x256xf32> to vector<16x256xbf16>
    %c0_9 = arith.constant 0 : index
    %c0_10 = arith.constant 0 : index
    %15 = vector.load %arg12[%c0_9, %c0_10] : memref<160x256xbf16, #tpu.memory_space<vmem>>, vector<16x256xbf16>
    tpu.vector_store %arg12[%c0_9, %c0_10], %14 {strides = array<i32>} : memref<160x256xbf16, #tpu.memory_space<vmem>>, vector<16x256xbf16>,
    %c1_i32 = arith.constant 1 : i32
    %16 = tpu.dynamic_rotate %9 by %c1_i32 dim 1 : vector<16x256xf32>, i32 -> vector<16x256xf32>
    %c1 = arith.constant 1 : index
    %c0_11 = arith.constant 0 : index
    %17 = vector.load %arg1[%c1, %c0_11] : memref<10x256xf32, #tpu.memory_space<vmem>>, vector<1x256xf32>
    %18 = vector.broadcast %17 : vector<1x256xf32> to vector<16x256xf32>
    %19 = arith.mulf %16, %18 : vector<16x256xf32>
    %20 = arith.truncf %19 : vector<16x256xf32> to vector<16x256xbf16>
    %c16 = arith.constant 16 : index
    %c0_12 = arith.constant 0 : index
    %21 = vector.load %arg12[%c16, %c0_12] : memref<160x256xbf16, #tpu.memory_space<vmem>>, vector<16x256xbf16>
    tpu.vector_store %arg12[%c16, %c0_12], %20 {strides = array<i32>} : memref<160x256xbf16, #tpu.memory_space<vmem>>, vector<16x256xbf16>,
    %22 = arith.truncf %9 : vector<16x256xf32> to vector<16x256xbf16>
    %c32 = arith.constant 32 : index
    %c0_13 = arith.constant 0 : index
    %23 = vector.load %arg12[%c32, %c0_13] : memref<160x256xbf16, #tpu.memory_space<vmem>>, vector<16x256xbf16>
    tpu.vector_store %arg12[%c32, %c0_13], %22 {strides = array<i32>} : memref<160x256xbf16, #tpu.memory_space<vmem>>, vector<16x256xbf16>,
    %c255_i32 = arith.constant 255 : i32
    %24 = tpu.dynamic_rotate %9 by %c255_i32 dim 1 : vector<16x256xf32>, i32 -> vector<16x256xf32>
    %c3 = arith.constant 3 : index
    %c0_14 = arith.constant 0 : index
    %25 = vector.load %arg1[%c3, %c0_14] : memref<10x256xf32, #tpu.memory_space<vmem>>, vector<1x256xf32>
    %26 = vector.broadcast %25 : vector<1x256xf32> to vector<16x256xf32>
    %27 = arith.mulf %24, %26 : vector<16x256xf32>
    %28 = arith.truncf %27 : vector<16x256xf32> to vector<16x256xbf16>
    %c48 = arith.constant 48 : index
    %c0_15 = arith.constant 0 : index
    %29 = vector.load %arg12[%c48, %c0_15] : memref<160x256xbf16, #tpu.memory_space<vmem>>, vector<16x256xbf16>
    tpu.vector_store %arg12[%c48, %c0_15], %28 {strides = array<i32>} : memref<160x256xbf16, #tpu.memory_space<vmem>>, vector<16x256xbf16>,
    %c254_i32 = arith.constant 254 : i32
    %30 = tpu.dynamic_rotate %9 by %c254_i32 dim 1 : vector<16x256xf32>, i32 -> vector<16x256xf32>
    %c4 = arith.constant 4 : index
    %c0_16 = arith.constant 0 : index
    %31 = vector.load %arg1[%c4, %c0_16] : memref<10x256xf32, #tpu.memory_space<vmem>>, vector<1x256xf32>
    %32 = vector.broadcast %31 : vector<1x256xf32> to vector<16x256xf32>
    %33 = arith.mulf %30, %32 : vector<16x256xf32>
    %34 = arith.truncf %33 : vector<16x256xf32> to vector<16x256xbf16>
    %c64 = arith.constant 64 : index
    %c0_17 = arith.constant 0 : index
    %35 = vector.load %arg12[%c64, %c0_17] : memref<160x256xbf16, #tpu.memory_space<vmem>>, vector<16x256xbf16>
    tpu.vector_store %arg12[%c64, %c0_17], %34 {strides = array<i32>} : memref<160x256xbf16, #tpu.memory_space<vmem>>, vector<16x256xbf16>,
    %c32_i32 = arith.constant 32 : i32
    %36 = tpu.dynamic_rotate %9 by %c32_i32 dim 1 : vector<16x256xf32>, i32 -> vector<16x256xf32>
    %c5 = arith.constant 5 : index
    %c0_18 = arith.constant 0 : index
    %37 = vector.load %arg1[%c5, %c0_18] : memref<10x256xf32, #tpu.memory_space<vmem>>, vector<1x256xf32>
    %38 = vector.broadcast %37 : vector<1x256xf32> to vector<16x256xf32>
    %39 = arith.mulf %36, %38 : vector<16x256xf32>
    %40 = arith.truncf %39 : vector<16x256xf32> to vector<16x256xbf16>
    %c80 = arith.constant 80 : index
    %c0_19 = arith.constant 0 : index
    %41 = vector.load %arg12[%c80, %c0_19] : memref<160x256xbf16, #tpu.memory_space<vmem>>, vector<16x256xbf16>
    tpu.vector_store %arg12[%c80, %c0_19], %40 {strides = array<i32>} : memref<160x256xbf16, #tpu.memory_space<vmem>>, vector<16x256xbf16>,
    %c16_i32 = arith.constant 16 : i32
    %42 = tpu.dynamic_rotate %9 by %c16_i32 dim 1 : vector<16x256xf32>, i32 -> vector<16x256xf32>
    %c6 = arith.constant 6 : index
    %c0_20 = arith.constant 0 : index
    %43 = vector.load %arg1[%c6, %c0_20] : memref<10x256xf32, #tpu.memory_space<vmem>>, vector<1x256xf32>
    %44 = vector.broadcast %43 : vector<1x256xf32> to vector<16x256xf32>
    %45 = arith.mulf %42, %44 : vector<16x256xf32>
    %46 = arith.truncf %45 : vector<16x256xf32> to vector<16x256xbf16>
    %c96 = arith.constant 96 : index
    %c0_21 = arith.constant 0 : index
    %47 = vector.load %arg12[%c96, %c0_21] : memref<160x256xbf16, #tpu.memory_space<vmem>>, vector<16x256xbf16>
    tpu.vector_store %arg12[%c96, %c0_21], %46 {strides = array<i32>} : memref<160x256xbf16, #tpu.memory_space<vmem>>, vector<16x256xbf16>,
    %48 = arith.truncf %9 : vector<16x256xf32> to vector<16x256xbf16>
    %c112 = arith.constant 112 : index
    %c0_22 = arith.constant 0 : index
    %49 = vector.load %arg12[%c112, %c0_22] : memref<160x256xbf16, #tpu.memory_space<vmem>>, vector<16x256xbf16>
    tpu.vector_store %arg12[%c112, %c0_22], %48 {strides = array<i32>} : memref<160x256xbf16, #tpu.memory_space<vmem>>, vector<16x256xbf16>,
    %c240_i32 = arith.constant 240 : i32
    %50 = tpu.dynamic_rotate %9 by %c240_i32 dim 1 : vector<16x256xf32>, i32 -> vector<16x256xf32>
    %c8 = arith.constant 8 : index
    %c0_23 = arith.constant 0 : index
    %51 = vector.load %arg1[%c8, %c0_23] : memref<10x256xf32, #tpu.memory_space<vmem>>, vector<1x256xf32>
    %52 = vector.broadcast %51 : vector<1x256xf32> to vector<16x256xf32>
    %53 = arith.mulf %50, %52 : vector<16x256xf32>
    %54 = arith.truncf %53 : vector<16x256xf32> to vector<16x256xbf16>
    %c128 = arith.constant 128 : index
    %c0_24 = arith.constant 0 : index
    %55 = vector.load %arg12[%c128, %c0_24] : memref<160x256xbf16, #tpu.memory_space<vmem>>, vector<16x256xbf16>
    tpu.vector_store %arg12[%c128, %c0_24], %54 {strides = array<i32>} : memref<160x256xbf16, #tpu.memory_space<vmem>>, vector<16x256xbf16>,
    %c224_i32 = arith.constant 224 : i32
    %56 = tpu.dynamic_rotate %9 by %c224_i32 dim 1 : vector<16x256xf32>, i32 -> vector<16x256xf32>
    %c9 = arith.constant 9 : index
    %c0_25 = arith.constant 0 : index
    %57 = vector.load %arg1[%c9, %c0_25] : memref<10x256xf32, #tpu.memory_space<vmem>>, vector<1x256xf32>
    %58 = vector.broadcast %57 : vector<1x256xf32> to vector<16x256xf32>
    %59 = arith.mulf %56, %58 : vector<16x256xf32>
    %60 = arith.truncf %59 : vector<16x256xf32> to vector<16x256xbf16>
    %c144 = arith.constant 144 : index
    %c0_26 = arith.constant 0 : index
    %61 = vector.load %arg12[%c144, %c0_26] : memref<160x256xbf16, #tpu.memory_space<vmem>>, vector<16x256xbf16>
    tpu.vector_store %arg12[%c144, %c0_26], %60 {strides = array<i32>} : memref<160x256xbf16, #tpu.memory_space<vmem>>, vector<16x256xbf16>,
    %c0_27 = arith.constant 0 : index
    %c0_28 = arith.constant 0 : index
    %62 = vector.load %arg12[%c0_27, %c0_28] : memref<160x256xbf16, #tpu.memory_space<vmem>>, vector<160x256xbf16>
    %c0_29 = arith.constant 0 : index
    %c0_30 = arith.constant 0 : index
    %63 = vector.load %arg5[%c0_29, %c0_30] : memref<16x160xbf16, #tpu.memory_space<vmem>>, vector<16x160xbf16>
    %cst_31 = arith.constant dense<0.000000e+00> : vector<16x256xf32>
    %64 = tpu.matmul %63, %62, %cst_31 {dimension_numbers = #tpu.dot_dimension_numbers<[1], [0], [0], [1], [0, 0, 1, 1], [], []>} : vector<16x160xbf16>, vector<160x256xbf16>, vector<16x256xf32> -> vector<16x256xf32>
    %c0_32 = arith.constant 0 : index
    %c0_33 = arith.constant 0 : index
    %65 = vector.load %arg6[%c0_32, %c0_33] : memref<16x1xf32, #tpu.memory_space<vmem>>, vector<16x1xf32>
    %66 = vector.broadcast %65 : vector<16x1xf32> to vector<16x256xf32>
    %67 = arith.addf %64, %66 : vector<16x256xf32>
    %cst_34 = arith.constant 0.000000e+00 : f32
    %68 = vector.broadcast %cst_34 : f32 to vector<16x256xf32>
    %69 = arith.maximumf %67, %68 : vector<16x256xf32>
    %70 = arith.truncf %69 : vector<16x256xf32> to vector<16x256xbf16>
    %c0_35 = arith.constant 0 : index
    %c0_36 = arith.constant 0 : index
    %71 = vector.load %arg7[%c0_35, %c0_36] : memref<16x16xbf16, #tpu.memory_space<vmem>>, vector<16x16xbf16>
    %cst_37 = arith.constant dense<0.000000e+00> : vector<16x256xf32>
    %72 = tpu.matmul %71, %70, %cst_37 {dimension_numbers = #tpu.dot_dimension_numbers<[1], [0], [0], [1], [0, 0, 1, 1], [], []>} : vector<16x16xbf16>, vector<16x256xbf16>, vector<16x256xf32> -> vector<16x256xf32>
    %c0_38 = arith.constant 0 : index
    %c0_39 = arith.constant 0 : index
    %73 = vector.load %arg8[%c0_38, %c0_39] : memref<16x1xf32, #tpu.memory_space<vmem>>, vector<16x1xf32>
    %74 = vector.broadcast %73 : vector<16x1xf32> to vector<16x256xf32>
    %75 = arith.addf %72, %74 : vector<16x256xf32>
    %cst_40 = arith.constant 0.000000e+00 : f32
    %76 = vector.broadcast %cst_40 : f32 to vector<16x256xf32>
    %77 = arith.maximumf %75, %76 : vector<16x256xf32>
    %78 = arith.truncf %77 : vector<16x256xf32> to vector<16x256xbf16>
    %c0_41 = arith.constant 0 : index
    %c0_42 = arith.constant 0 : index
    %79 = vector.load %arg9[%c0_41, %c0_42] : memref<16x16xbf16, #tpu.memory_space<vmem>>, vector<16x16xbf16>
    %cst_43 = arith.constant dense<0.000000e+00> : vector<16x256xf32>
    %80 = tpu.matmul %79, %78, %cst_43 {dimension_numbers = #tpu.dot_dimension_numbers<[1], [0], [0], [1], [0, 0, 1, 1], [], []>} : vector<16x16xbf16>, vector<16x256xbf16>, vector<16x256xf32> -> vector<16x256xf32>
    %c0_44 = arith.constant 0 : index
    %c0_45 = arith.constant 0 : index
    %81 = vector.load %arg10[%c0_44, %c0_45] : memref<16x1xf32, #tpu.memory_space<vmem>>, vector<16x1xf32>
    %82 = vector.broadcast %81 : vector<16x1xf32> to vector<16x256xf32>
    %83 = arith.addf %80, %82 : vector<16x256xf32>
    %cst_46 = arith.constant 0.000000e+00 : f32
    %84 = vector.broadcast %cst_46 : f32 to vector<16x256xf32>
    %85 = arith.maximumf %83, %84 : vector<16x256xf32>
    %86 = arith.addf %1, %85 : vector<16x256xf32>
    %c0_47 = arith.constant 0 : index
    %c0_48 = arith.constant 0 : index
    %c0_49 = arith.constant 0 : index
    %87 = vector.load %arg11[%c0_47, %c0_48, %c0_49] : memref<1x16x256xf32, #tpu.memory_space<vmem>>, vector<1x16x256xf32>
    %88 = vector.shape_cast %87 : vector<1x16x256xf32> to vector<16x256xf32>
    %89 = vector.shape_cast %86 : vector<16x256xf32> to vector<1x16x256xf32>
    tpu.vector_store %arg11[%c0_47, %c0_48, %c0_49], %89 {strides = array<i32>} : memref<1x16x256xf32, #tpu.memory_space<vmem>>, vector<1x16x256xf32>,
    return
  }
  func.func @transform_0(%arg0: i32) -> (i32, i32) {
    %c0_i32 = arith.constant 0 : i32
    %c0_i32_0 = arith.constant 0 : i32
    %c0_i32_1 = arith.constant 0 : i32
    return %c0_i32, %c0_i32_0 : i32, i32
  }
  func.func @transform_1(%arg0: i32) -> (i32, i32, i32) {
    %c0_i32 = arith.constant 0 : i32
    %c0_i32_0 = arith.constant 0 : i32
    %c0_i32_1 = arith.constant 0 : i32
    return %arg0, %c0_i32, %c0_i32_0 : i32, i32, i32
  }
  func.func @transform_2(%arg0: i32) -> (i32, i32) {
    %c0_i32 = arith.constant 0 : i32
    %c0_i32_0 = arith.constant 0 : i32
    %c0_i32_1 = arith.constant 0 : i32
    return %c0_i32, %c0_i32_0 : i32, i32
  }
  func.func @transform_3(%arg0: i32) -> (i32, i32) {
    %c0_i32 = arith.constant 0 : i32
    %c0_i32_0 = arith.constant 0 : i32
    %c0_i32_1 = arith.constant 0 : i32
    return %c0_i32, %c0_i32_0 : i32, i32
  }
  func.func @transform_4(%arg0: i32) -> (i32, i32) {
    %c0_i32 = arith.constant 0 : i32
    %c0_i32_0 = arith.constant 0 : i32
    %c0_i32_1 = arith.constant 0 : i32
    return %c0_i32, %c0_i32_0 : i32, i32
  }
  func.func @transform_5(%arg0: i32) -> (i32, i32) {
    %c0_i32 = arith.constant 0 : i32
    %c0_i32_0 = arith.constant 0 : i32
    %c0_i32_1 = arith.constant 0 : i32
    return %c0_i32, %c0_i32_0 : i32, i32
  }
  func.func @transform_6(%arg0: i32) -> (i32, i32) {
    %c0_i32 = arith.constant 0 : i32
    %c0_i32_0 = arith.constant 0 : i32
    %c0_i32_1 = arith.constant 0 : i32
    return %c0_i32, %c0_i32_0 : i32, i32
  }
  func.func @transform_7(%arg0: i32) -> (i32, i32) {
    %c0_i32 = arith.constant 0 : i32
    %c0_i32_0 = arith.constant 0 : i32
    %c0_i32_1 = arith.constant 0 : i32
    return %c0_i32, %c0_i32_0 : i32, i32
  }
  func.func @transform_8(%arg0: i32) -> (i32, i32) {
    %c0_i32 = arith.constant 0 : i32
    %c0_i32_0 = arith.constant 0 : i32
    %c0_i32_1 = arith.constant 0 : i32
    return %c0_i32, %c0_i32_0 : i32, i32
  }
  func.func @transform_9(%arg0: i32) -> (i32, i32) {
    %c0_i32 = arith.constant 0 : i32
    %c0_i32_0 = arith.constant 0 : i32
    %c0_i32_1 = arith.constant 0 : i32
    return %c0_i32, %c0_i32_0 : i32, i32
  }
  func.func @transform_10(%arg0: i32) -> (i32, i32, i32) {
    %c0_i32 = arith.constant 0 : i32
    %c0_i32_0 = arith.constant 0 : i32
    %c0_i32_1 = arith.constant 0 : i32
    return %arg0, %c0_i32, %c0_i32_0 : i32, i32, i32
  }
}

</mosaic_0001>

<bundles_post_ra>
// kernel: tpu_custom_call.1
= control target key start
LH: loop header
LB: loop body
LE: loop exit
PB: predicated region body
PF: predicated region fallthrough
CT: control target
= control target key end

     0   :  { %15 = vsyncpa [#allocation4], 0  ;;  %s1765_s0 = inlined_call_operand.hbm [shape: f32[10,256], index: 0, kind: input, shape index: {}]   ;;  %s1766_s1 = inlined_call_operand.vmem [shape: f32[2,16,256], index: 1, kind: input, shape index: {}]   ;;  %s1767_s2 = inlined_call_operand.hbm [shape: bf16[16,16], index: 2, kind: input, shape index: {}]   ;;  %s1768_s3 = inlined_call_operand.vmem [shape: f32[16,1], index: 3, kind: input, shape index: {}]   ;;  %s1769_s4 = inlined_call_operand.vmem [shape: bf16[16,160], index: 4, kind: input, shape index: {}]   ;;  %s1770_s5 = inlined_call_operand.vmem [shape: f32[16,1], index: 5, kind: input, shape index: {}]   ;;  %s1771_s6 = inlined_call_operand.vmem [shape: bf16[16,16], index: 6, kind: input, shape index: {}]   ;;  %s1772_s7 = inlined_call_operand.vmem [shape: f32[16,1], index: 7, kind: input, shape index: {}]   ;;  %s1773_s8 = inlined_call_operand.vmem [shape: bf16[16,16], index: 8, kind: input, shape index: {}]   ;;  %s1774_s9 = inlined_call_operand.vmem [shape: f32[16,1], index: 9, kind: input, shape index: {}]   ;;  %s1775_s10 = inlined_call_operand.hbm [shape: f32[2,16,256], index: 10, kind: output, shape index: {}]  }
   0x1   :  { %16 = vsyncpa [#allocation7], 0 }
   0x2   :  { %17 = vsyncpa [#allocation5], 0 }
   0x3   :  { %19 = vsyncpa [#allocation5 + $0x1], 0  ;;  %s1395_s13 = smov 0   ;;  %s1397_s14 = smov 0  }
   0x4   :  { %s1399_s15 = smov 0   ;;  %s1401_s16 = smov 0  }
   0x5 LB: > { %1783 = sst [smem:[#allocation12_spill]] %s1317_s15  ;;  %s1416_s17 = sadd.s32 4294967295, %s1321_s16   ;;  %s1321_s16 = sphi %s1401_s16, %s1799_s16   ;;  %s1317_s15 = sphi %s1399_s15, %s1801_s15   ;;  %s1313_s14 = sphi %s1397_s14, %s1803_s14   ;;  %s1309_s13 = sphi %s1395_s13, %s1802_s13  }
   0x6   : > { %s1086_s18 = sadd.s32 4294967294, %s1321_s16   ;;  %s1420_s19 = sadd.s32 1, %s1321_s16  }
   0x7   : > { %1784 = sst [smem:[#allocation13_spill]] %s1420_s19  ;;  %s247_s20 = sadd.s32 1, %s1317_s15 }
   0x8   : > { %s244_s21 = ssub.s32 %s1321_s16, %s1420_s19  ;;  %p257_p0 = scmp.ne.s32.totalorder %s1317_s15, %s1313_s14 }
   0x9   : > { %p245_p1 = scmp.eq.s32.totalorder %s244_s21, 0  ;;  %p258_p2 = scmp.eq.s32.totalorder %s1416_s17, 1 }
   0xa   : > { %p263_p3 = scmp.ne.s32.totalorder %s1313_s14, %s1309_s13  ;;  %p264_p4 = scmp.eq.s32.totalorder %s1086_s18, 1 }
   0xb   : > { %s1431_s22 = scalar_select %p245_p1, %s1317_s15, %s247_s20  }
   0xc   : > { %p1433_p5 = por %p258_p2, %p257_p0  ;;  %p1437_p6 = por %p264_p4, %p263_p3 }
   0xd   : > { %1785 = sst [smem:[#allocation14_spill]] %s1431_s22  ;;  %p1087_p7 = scmp.ge.s32.totalorder %s1321_s16, 1 }
   0xe   : > { %s1786_s23 = scalar_select %p1433_p5, 1, 0 }
   0xf   : > { %s1787_s24 = scalar_select %p1437_p6, 1, 0 }
  0x10   : > { %p271_p8 = scmp.lt.s32.totalorder %s1321_s16, 3  ;;  %p1776_p9 = scmp.eq.s32.totalorder %s1416_s17, 0 }
  0x11   : > { %1788 = sst [smem:[#allocation15_spill]] %s1787_s24  ;;  %s1323_s26 = smov [#allocation3]  }
  0x12   : > { %p1444_p10 = pnand %p1087_p7, %p271_p8  ;;  %s283_s27 = sshll.u32 %s1323_s26, 4  ;;  %s284_s27 = int_to_ptr.vmem [resolvable:$true] %s283_s27 }
  0x13   : > { %s1324_s29 = smov [#allocation6]   ;;  %s1195_s18 = scalar_lea.hbm %s1765_s0, 512 }
  0x14   : > { %s1789_s25 = scalar_select %p1444_p10, 1, 0 }
  0x15   : > { %p1123_p11 = pneg %p1444_p10  ;;  %s296_s30 = sshll.u32 %s1324_s29, 4  ;;  %s1456_s30 = int_to_ptr.vmem [resolvable:$true] %s296_s30 }
  0x16   : > { %p1196_p13 = scmp.ne.s32.totalorder %s1765_s0, %s1195_s18  ;;  %p1202_p3 = scmp.lt.u32.totalorder %s1195_s18, %s1765_s0 }
  0x17   : > { %p1452_p12 = pnand %p1776_p9, %p1123_p11 }
  0x19   : > { %p1197_p0 = pneg %p1452_p12 }
  0x1b   : > { %p1198_p1 = pnand %p1197_p0, %p1196_p13 }
  0x1d   : > { %p1199_p2 = pneg %p1198_p1 }
  0x1f   : > { %p1204_p4 = pnand %p1202_p3, %p1199_p2 }
  0x21   : > { %1207 = shalt.err (!%p1204_p4)
}
  0x22   : > { %s1208_s29 = scalar_lea.vmem %s284_s27, 512  ;;  %p1216_p9 = scmp.lt.s32.totalorder %s284_s27, %s284_s27 }
  0x23   : > { %p1209_p7 = scmp.ne.s32.totalorder %s284_s27, %s1208_s29  ;;  %p1217_p6 = scmp.lt.s32.totalorder %s1208_s29, %s1208_s29 }
  0x25   : > { %p1211_p8 = pnand %p1209_p7, %p1197_p0  ;;  %p1218_p5 = por %p1217_p6, %p1216_p9 }
  0x27   : > { %p1212_p11 = pneg %p1211_p8 }
  0x29   : > { %p1219_p10 = pnand %p1218_p5, %p1212_p11 }
  0x2b   : > { %1222 = shalt.err (!%p1219_p10)
}
  0x2c   : > { %s1325_s11 = smov 256   ;;  %s1326_s12 = smov 16  }
  0x2d   : > { %1126 = dma.hbm_to_vmem [thread:$0]  (!%p1452_p12), %s1765_s0, 512, %s284_s27, [#allocation4], %s1325_s11, %s1325_s11, %s1326_s12  }
  0x2e   : > { %s1223_s26 = scalar_lea.hbm %s1767_s2, 128 }
  0x2f   : > { %p1224_p13 = scmp.ne.s32.totalorder %s1767_s2, %s1223_s26  ;;  %p1230_p9 = scmp.lt.u32.totalorder %s1223_s26, %s1767_s2 }
  0x31   : > { %p1226_p5 = pnand %p1224_p13, %p1197_p0 }
  0x33   : > { %p1227_p6 = pneg %p1226_p5 }
  0x35   : > { %p1232_p10 = pnand %p1230_p9, %p1227_p6 }
  0x37   : > { %1235 = shalt.err (!%p1232_p10)
}
  0x38   : > { %s1236_s27 = scalar_lea.vmem %s1456_s30, 128  ;;  %p1244_p4 = scmp.lt.s32.totalorder %s1456_s30, %s1456_s30 }
  0x39   : > { %p1237_p1 = scmp.ne.s32.totalorder %s1456_s30, %s1236_s27  ;;  %p1245_p7 = scmp.lt.s32.totalorder %s1236_s27, %s1236_s27 }
  0x3b   : > { %p1239_p2 = pnand %p1237_p1, %p1197_p0  ;;  %p1246_p8 = por %p1245_p7, %p1244_p4 }
  0x3d   : > { %p1240_p3 = pneg %p1239_p2 }
  0x3f   : > { %p1247_p11 = pnand %p1246_p8, %p1240_p3 }
  0x41   : > { %1250 = shalt.err (!%p1247_p11)
}
  0x42   : > { %s1327_s15 = smov 64   ;;  %s1328_s19 = smov 4  }
  0x43   : > { %1129 = dma.hbm_to_vmem [thread:$0]  (!%p1452_p12), %s1767_s2, 128, %s1456_s30, [#allocation7], %s1327_s15, %s1327_s15, %s1328_s19  }
  0x44   : > { %p1791_p13 = scmp.ne.s32.totalorder %s1789_s25, 0 }
  0x45   : > { %p1792_p0 = scmp.eq.s32.totalorder (!%p1791_p13), %s1416_s17, 0 }
  0x46   : > { %341 = sbr.rel (%p1791_p13) target bundleno = 1184 (0x4a0), region = 60 }
  0x4d   : > { %1296 = dma.done.wait (%p1792_p0), [#allocation4], 512   ;;  %p1793_p5 = pmov %p1792_p0 }
  0x4e   : > { %p1794_p6 = pmov %p1792_p0 }
  0x4f   : > { %1298 = vsyncadd (%p1793_p5), [#allocation4], 4294966784 }
  0x50   : > { %1300 = dma.done.wait (%p1794_p6), [#allocation7], 128   ;;  %p1795_p9 = pmov %p1792_p0 }
  0x51   : > { %p383_p10 = scmp.lt.s32.totalorder %s1416_s17, 1  ;;  %v1329_v0 = vmov 0   ;;  %v1189_v7 = vld [vmem:[#allocation6] sm:$0xff]   ;;  %v398_v9 = vld [vmem:[%s1768_s3 + $0x8] sm:$0xff]  ;;  %vm414_vm0 = vcmask 130048   ;;  %s1330_s29 = smov 1   ;;  %v473_v41 = vlaneseq }
  0x52   : > { %1302 = vsyncadd (%p1795_p9), [#allocation7], 4294967168  ;;  %450 = vmatprep.mubr.bf16.mxu0 %v1329_v0  ;;  %1187 = vset.pattern.permute.xlu0 %v1329_v0  ;;  %v397_v8 = vld [vmem:[%s1768_s3] sm:$0xff]  ;;  %s1331_s27 = smov 2   ;;  %s1332_s15 = smov 127   ;;  %vm787_vm1 = vcmask 261120  }
  0x53   : > { %s384_s25 = scalar_select %p383_p10, %s1416_s17, 1  ;;  %1188 = vset.pattern.permute.xlu1 %v1329_v0  ;;  %401 = vperm.xlu0 %1187, %v397_v8   ;;  %v766_v26 = vld [vmem:[%s1770_s5] sm:$0xff]  ;;  %v767_v30 = vld [vmem:[%s1770_s5 + $0x8] sm:$0xff]  ;;  %v483_v44 = vshrl.u32 %v473_v41, 7  ;;  %v1582_v45 = vand.u32 127, %v473_v41 }
  0x54   : > { %s1333_s19 = smov 126   ;;  %s1334_s24 = smov 32   ;;  %v1192_v27 = vld [vmem:[%s1769_s4 + $0x4] ss:$8 sps:$4 sm:$0xff]  }
  0x55   : > { %s1111_s28 = sshll.u32 %s384_s25, 5  ;;  %s1335_s11 = smov 16   ;;  %1101 = vmatprep.mubr.msk.bf16.mxu1 %vm787_vm1, %v1192_v27  ;;  %v842_v28 = vld [vmem:[%s1772_s7] sm:$0xff]  ;;  %v843_v31 = vld [vmem:[%s1772_s7 + $0x8] sm:$0xff]  ;;  %v1586_v48 = vsub.s32 0, %v483_v44  ;;  %v1588_v49 = vsub.s32 1, %v483_v44 }
  0x56   : > { %s387_s22 = scalar_lea.vmem %s1766_s1, %s1111_s28  ;;  %s1336_s25 = smov 112   ;;  %v913_v29 = vld [vmem:[%s1774_s9] sm:$0xff]  ;;  %v914_v32 = vld [vmem:[%s1774_s9 + $0x8] sm:$0xff]  ;;  %vm475_vm2 = vcmp.lt.s32.totalorder %v1582_v45, 2  ;;  %vm508_vm3 = vcmp.lt.s32.totalorder %v1582_v45, 1  ;;  %vm546_vm4 = vcmp.lt.s32.totalorder %v1582_v45, 127 }
  0x57   : > { %v1523_v1 = vld [vmem:[%s387_s22 + $0x8] sm:$0xff]  ;;  %v1525_v2 = vld [vmem:[%s387_s22 + $0x18] sm:$0xff]  ;;  %v1527_v3 = vld [vmem:[%s387_s22] sm:$0xff]  ;;  %406 = vperm.xlu0 %1187, %v398_v9   ;;  %s1337_s28 = smov 96   ;;  %vm580_vm5 = vcmp.lt.s32.totalorder %v1582_v45, 126  ;;  %vm614_vm6 = vcmp.lt.s32.totalorder %v1582_v45, 32 }
  0x58   : > { %v394_v4 = vpack.c.bf16 %v1525_v2, %v1523_v1  ;;  %v1531_v5 = vld [vmem:[%s387_s22 + $0x10] sm:$0xff]  ;;  %v480_v50 = vld [vmem:[#allocation3] ss:$8 sm:$0x3]  ;;  %vm648_vm7 = vcmp.lt.s32.totalorder %v1582_v45, 16  ;;  %vm684_vm8 = vcmp.lt.s32.totalorder %v1582_v45, 112 }
  0x59   : > { %v393_v6 = vpack.c.bf16 %v1531_v5, %v1527_v3  ;;  %v485_v53 = vrot.slane %v480_v50, %v1586_v48  ;;  %v514_v54 = vld [vmem:[#allocation3 + $0x1] ss:$8 sm:$0x3]  ;;  %v489_v55 = vrot.slane %v480_v50, %v1588_v49  ;;  %v620_v50 = vld [vmem:[#allocation3 + $0x5] ss:$8 sm:$0x3] }
  0x5a   : > { %418 = vmatprep.subr.bf16.mxu0 %v394_v4  ;;  %v519_v60 = vrot.slane %v514_v54, %v1586_v48  ;;  %v523_v61 = vrot.slane %v514_v54, %v1588_v49  ;;  %vm718_vm9 = vcmp.lt.s32.totalorder %v1582_v45, 96  ;;  %s380_s26 = sand.u32 1, %s1313_s14   ;;  %p1796_p1 = scmp.ne.s32.totalorder %s1786_s23, 0 }
  0x5b   : > { %419 = vmatpush1.bf16.msra.mxu0 %v393_v6  ;;  %s1338_s12 = smov [#allocation8]  }
  0x5c   : > { %s1255_s22 = sshll.u32 %s1338_s12, 4  ;;  %s1256_s22 = int_to_ptr.vmem [resolvable:$false] %s1255_s22 }
  0x5d   : > { %s1257_s18 = scalar_lea.vmem %s1256_s22, 1024 }
  0x5e   : > { %1098 = vmatmul.mubr.msk.bf16.vlgmr.msra.gmra.mrb[0].mxu0 %vm414_vm0, %v1189_v7 }
  0x5f   : > { %894 = vmatprep.mubr.bf16.mxu0 %v1329_v0 }
  0xd2   : > { %v402_v10 = vpop.permute.xlu0 %401 }
  0xd6   : > { %v407_v14 = vpop.permute.xlu0 %406 }
 0x131   : > { %v452_v11 = vpop.f32.mrb[0].mxu0 }
 0x132   : > { %v453_v12 = vadd.f32 %v452_v11, %v402_v10  ;;  %v454_v13 = vpop.f32.mrb[1].mxu0 }
 0x133   : > { %v455_v15 = vadd.f32 %v454_v13, %v402_v10  ;;  %v456_v16 = vpop.f32.mrb[2].mxu0 }
 0x134   : > { %v461_v17 = vmax.f32 %v453_v12, 0.0  ;;  %v457_v18 = vadd.f32 %v456_v16, %v407_v14  ;;  %v458_v19 = vpop.f32.mrb[3].mxu0 }
 0x135   : > { %v459_v20 = vadd.f32 %v458_v19, %v407_v14  ;;  %v462_v22 = vmax.f32 %v455_v15, 0.0 }
 0x136   : > { %v463_v21 = vmax.f32 %v457_v18, 0.0  ;;  %500 = vrot.lane.b32.xlu0 %v461_v17, %s1330_s29  ;;  %465 = vrot.lane.b32.xlu1 %v461_v17, %s1331_s27 }
 0x137   : > { %v464_v23 = vmax.f32 %v459_v20, 0.0 }
 0x138   : > { %v1543_v24 = vpack.c.bf16 %v463_v21, %v461_v17 }
 0x139   : > { %v1545_v25 = vpack.c.bf16 %v464_v23, %v462_v22 }
 0x13a   : > { %538 = vrot.lane.b32.xlu0 %v461_v17, %s1332_s15  ;;  %467 = vrot.lane.b32.xlu1 %v463_v21, %s1331_s27 }
 0x13e   : > { %572 = vrot.lane.b32.xlu0 %v461_v17, %s1333_s19  ;;  %502 = vrot.lane.b32.xlu1 %v463_v21, %s1330_s29 }
 0x142   : > { %606 = vrot.lane.b32.xlu0 %v461_v17, %s1334_s24  ;;  %540 = vrot.lane.b32.xlu1 %v463_v21, %s1332_s15 }
 0x146   : > { %640 = vrot.lane.b32.xlu0 %v461_v17, %s1335_s11  ;;  %574 = vrot.lane.b32.xlu1 %v463_v21, %s1333_s19 }
 0x14a   : > { %469 = vrot.lane.b32.xlu0 %v462_v22, %s1331_s27  ;;  %608 = vrot.lane.b32.xlu1 %v463_v21, %s1334_s24 }
 0x14e   : > { %504 = vrot.lane.b32.xlu0 %v462_v22, %s1330_s29  ;;  %642 = vrot.lane.b32.xlu1 %v463_v21, %s1335_s11 }
 0x152   : > { %676 = vrot.lane.b32.xlu0 %v461_v17, %s1336_s25  ;;  %471 = vrot.lane.b32.xlu1 %v464_v23, %s1331_s27 }
 0x156   : > { %542 = vrot.lane.b32.xlu0 %v462_v22, %s1332_s15  ;;  %506 = vrot.lane.b32.xlu1 %v464_v23, %s1330_s29  ;;  %s1094_s29 = sshll.u32 %s380_s26, 5 }
 0x157   : > { %s382_s27 = scalar_lea.vmem [#allocation8], %s1094_s29 }
 0x15a   : > { %576 = vrot.lane.b32.xlu0 %v462_v22, %s1333_s19  ;;  %678 = vrot.lane.b32.xlu1 %v463_v21, %s1336_s25 }
 0x15e   : > { %610 = vrot.lane.b32.xlu0 %v462_v22, %s1334_s24  ;;  %544 = vrot.lane.b32.xlu1 %v464_v23, %s1332_s15  ;;  %s1002_s15 = sshll.u32 %s382_s27, 4  ;;  %s1714_s15 = int_to_ptr.vmem [resolvable:$true] %s1002_s15 }
 0x15f   : > { %p1258_p4 = scmp.lt.s32.totalorder %s1714_s15, %s1256_s22 }
 0x162   : > { %644 = vrot.lane.b32.xlu0 %v462_v22, %s1335_s11  ;;  %578 = vrot.lane.b32.xlu1 %v464_v23, %s1333_s19  ;;  %s1112_s19 = sshll.u32 %s1416_s17, 9  ;;  %s1723_s17 = scalar_lea.sflag [#allocation5], %s380_s26 }
 0x163   : > { %s1721_s30 = scalar_lea.hbm %s1775_s10, %s1112_s19 }
 0x166   : > { %680 = vrot.lane.b32.xlu0 %v462_v22, %s1336_s25  ;;  %612 = vrot.lane.b32.xlu1 %v464_v23, %s1334_s24 }
 0x16a   : > { %710 = vrot.lane.b32.xlu0 %v461_v17, %s1337_s28  ;;  %646 = vrot.lane.b32.xlu1 %v464_v23, %s1335_s11 }
 0x16e   : > { %714 = vrot.lane.b32.xlu0 %v462_v22, %s1337_s28  ;;  %712 = vrot.lane.b32.xlu1 %v463_v21, %s1337_s28  ;;  %v552_v21 = vld [vmem:[#allocation3 + $0x3] ss:$8 sm:$0x3] }
 0x172   : > { %770 = vperm.xlu0 %1187, %v766_v26   ;;  %682 = vrot.lane.b32.xlu1 %v464_v23, %s1336_s25 }
 0x176   : > { %846 = vperm.xlu0 %1187, %v842_v28   ;;  %716 = vrot.lane.b32.xlu1 %v464_v23, %s1337_s28  ;;  %v557_v28 = vrot.slane %v552_v21, %v1586_v48  ;;  %s1251_s28 = scalar_lea.vmem %s1714_s15, 512 }
 0x177   : > { %p1252_p12 = scmp.ne.s32.totalorder %s1714_s15, %s1251_s28  ;;  %p1259_p7 = scmp.lt.s32.totalorder %s1257_s18, %s1251_s28 }
 0x179   : > { %p1253_p2 = pnand %p1252_p12, %p1796_p1  ;;  %p1260_p8 = por %p1259_p7, %p1258_p4 }
 0x17a   : > { %917 = vperm.xlu0 %1187, %v913_v29   ;;  %775 = vperm.xlu1 %1188, %v767_v30   ;;  %v561_v29 = vrot.slane %v552_v21, %v1588_v49  ;;  %v586_v30 = vld [vmem:[#allocation3 + $0x4] ss:$8 sm:$0x3] }
 0x17b   : > { %p1254_p3 = pneg %p1253_p2 }
 0x17d   : > { %p1261_p11 = pnand %p1260_p8, %p1254_p3 }
 0x17e   : > { %851 = vperm.xlu1 %1188, %v843_v31  }
 0x182   : > { %922 = vperm.xlu1 %1188, %v914_v32  }
 0x1a8   : > { %v501_v33 = vpop.permute.xlu0 %500  ;;  %v466_v34 = vpop.permute.xlu1 %465 }
 0x1ac   : > { %v539_v35 = vpop.permute.xlu0 %538  ;;  %v468_v36 = vpop.permute.xlu1 %467 }
 0x1b0   : > { %v1572_v37 = vpop.permute.xlu0 %572  ;;  %v503_v38 = vpop.permute.xlu1 %502 }
 0x1b4   : > { %v1574_v39 = vpop.permute.xlu0 %606  ;;  %v1576_v40 = vpop.permute.xlu1 %540 }
 0x1b8   : > { %v1578_v42 = vpop.permute.xlu0 %640  ;;  %v1580_v43 = vpop.permute.xlu1 %574 }
 0x1bc   : > { %v470_v46 = vpop.permute.xlu0 %469  ;;  %v1584_v47 = vpop.permute.xlu1 %608 }
 0x1bd   : > { %v476_v56 = vsel %vm475_vm2, %v466_v34, %v470_v46  ;;  %v478_v57 = vsel %vm475_vm2, %v470_v46, %v466_v34 }
 0x1be   : > { %v492_v4 = vmul.f32 %v485_v53, %v478_v57  ;;  %v493_v7 = vmul.f32 %v489_v55, %v476_v56 }
 0x1c0   : > { %v505_v51 = vpop.permute.xlu0 %504  ;;  %v1591_v52 = vpop.permute.xlu1 %642 }
 0x1c1   : > { %v509_v9 = vsel %vm508_vm3, %v501_v33, %v505_v51  ;;  %v511_v10 = vsel %vm508_vm3, %v505_v51, %v501_v33 }
 0x1c2   : > { %v526_v17 = vmul.f32 %v519_v60, %v511_v10  ;;  %v527_v18 = vmul.f32 %v523_v61, %v509_v9 }
 0x1c4   : > { %v1596_v58 = vpop.permute.xlu0 %676  ;;  %v472_v59 = vpop.permute.xlu1 %471 }
 0x1c5   : > { %v477_v62 = vsel %vm475_vm2, %v468_v36, %v472_v59  ;;  %v479_v63 = vsel %vm475_vm2, %v472_v59, %v468_v36  ;;  %v591_v36 = vrot.slane %v586_v30, %v1586_v48 }
 0x1c6   : > { %v494_v6 = vmul.f32 %v485_v53, %v479_v63  ;;  %v495_v8 = vmul.f32 %v489_v55, %v477_v62 }
 0x1c8   : > { %v543_v11 = vpop.permute.xlu0 %542  ;;  %v507_v12 = vpop.permute.xlu1 %506  ;;  %v497_v13 = vpack.c.bf16 %v495_v8, %v493_v7  ;;  %v496_v14 = vpack.c.bf16 %v494_v6, %v492_v4  ;;  %v654_v6 = vld [vmem:[#allocation3 + $0x6] ss:$8 sm:$0x3] }
 0x1c9   : > { %v510_v15 = vsel %vm508_vm3, %v503_v38, %v507_v12  ;;  %v512_v16 = vsel %vm508_vm3, %v507_v12, %v503_v38  ;;  %v547_v31 = vsel %vm546_vm4, %v539_v35, %v543_v11  ;;  %v549_v32 = vsel %vm546_vm4, %v543_v11, %v539_v35 }
 0x1ca   : > { %v528_v19 = vmul.f32 %v519_v60, %v512_v16  ;;  %v529_v20 = vmul.f32 %v523_v61, %v510_v15  ;;  %791 = vmatprep.subr.bf16.mxu1 %v497_v13  ;;  %v595_v38 = vrot.slane %v586_v30, %v1588_v49  ;;  %v564_v35 = vmul.f32 %v557_v28, %v547_v31 }
 0x1cb   : > { %792 = vmatpush1.bf16.msra.mxu1 %v496_v14  ;;  %v565_v46 = vmul.f32 %v561_v29, %v549_v32  ;;  %v625_v60 = vrot.slane %v620_v50, %v1586_v48  ;;  %v629_v61 = vrot.slane %v620_v50, %v1588_v49  ;;  %v659_v14 = vrot.slane %v654_v6, %v1586_v48 }
 0x1cc   : > { %v577_v22 = vpop.permute.xlu0 %576  ;;  %v1609_v23 = vpop.permute.xlu1 %678  ;;  %v531_v26 = vpack.c.bf16 %v529_v20, %v527_v18  ;;  %v530_v27 = vpack.c.bf16 %v528_v19, %v526_v17  ;;  %v663_v15 = vrot.slane %v654_v6, %v1588_v49 }
 0x1cd   : > { %v581_v54 = vsel %vm580_vm5, %v1572_v37, %v577_v22  ;;  %v583_v55 = vsel %vm580_vm5, %v577_v22, %v1572_v37 }
 0x1ce   : > { %793 = vmatprep.subr.bf16.mxu1 %v531_v26  ;;  %v598_v63 = vmul.f32 %v591_v36, %v581_v54  ;;  %v599_v4 = vmul.f32 %v595_v38, %v583_v55 }
 0x1cf   : > { %794 = vmatpush1.bf16.msra.mxu1 %v530_v27 }
 0x1d0   : > { %v611_v33 = vpop.permute.xlu0 %610  ;;  %795 = vmatprep.subr.bf16.mxu1 %v1545_v25  ;;  %v545_v34 = vpop.permute.xlu1 %544 }
 0x1d1   : > { %v548_v41 = vsel %vm546_vm4, %v1576_v40, %v545_v34  ;;  %v550_v44 = vsel %vm546_vm4, %v545_v34, %v1576_v40  ;;  %v615_v9 = vsel %vm614_vm6, %v1574_v39, %v611_v33  ;;  %v617_v10 = vsel %vm614_vm6, %v611_v33, %v1574_v39 }
 0x1d2   : > { %v566_v51 = vmul.f32 %v557_v28, %v548_v41  ;;  %v567_v53 = vmul.f32 %v561_v29, %v550_v44  ;;  %v632_v39 = vmul.f32 %v625_v60, %v617_v10  ;;  %v633_v18 = vmul.f32 %v629_v61, %v615_v9 }
 0x1d3   : > { %796 = vmatpush1.bf16.msra.mxu1 %v1543_v24 }
 0x1d4   : > { %v645_v56 = vpop.permute.xlu0 %644  ;;  %v579_v57 = vpop.permute.xlu1 %578  ;;  %v569_v40 = vpack.c.bf16 %v567_v53, %v565_v46  ;;  %v568_v59 = vpack.c.bf16 %v566_v51, %v564_v35  ;;  %v724_v46 = vld [vmem:[#allocation3 + $0x11] ss:$8 sm:$0x3] }
 0x1d5   : > { %v582_v62 = vsel %vm580_vm5, %v1580_v43, %v579_v57  ;;  %v584_v37 = vsel %vm580_vm5, %v579_v57, %v1580_v43  ;;  %v649_v21 = vsel %vm648_vm7, %v1578_v42, %v645_v56  ;;  %v651_v22 = vsel %vm648_vm7, %v645_v56, %v1578_v42 }
 0x1d6   : > { %v600_v7 = vmul.f32 %v591_v36, %v582_v62  ;;  %v601_v8 = vmul.f32 %v595_v38, %v584_v37  ;;  %797 = vmatprep.subr.bf16.mxu1 %v569_v40  ;;  %v666_v30 = vmul.f32 %v659_v14, %v651_v22  ;;  %v667_v31 = vmul.f32 %v663_v15, %v649_v21  ;;  %v690_v36 = vld [vmem:[#allocation3 + $0x10] ss:$8 sm:$0x3] }
 0x1d7   : > { %798 = vmatpush1.bf16.msra.mxu1 %v568_v59  ;;  %v695_v44 = vrot.slane %v690_v36, %v1586_v48  ;;  %v699_v35 = vrot.slane %v690_v36, %v1588_v49  ;;  %v729_v54 = vrot.slane %v724_v46, %v1586_v48  ;;  %v733_v55 = vrot.slane %v724_v46, %v1588_v49 }
 0x1d8   : > { %v681_v11 = vpop.permute.xlu0 %680  ;;  %v613_v12 = vpop.permute.xlu1 %612  ;;  %v603_v43 = vpack.c.bf16 %v601_v8, %v599_v4  ;;  %v602_v13 = vpack.c.bf16 %v600_v7, %v598_v63 }
 0x1d9   : > { %v616_v16 = vsel %vm614_vm6, %v1584_v47, %v613_v12  ;;  %v618_v17 = vsel %vm614_vm6, %v613_v12, %v1584_v47  ;;  %v687_v50 = vsel %vm684_vm8, %v681_v11, %v1596_v58 }
 0x1da   : > { %v634_v19 = vmul.f32 %v625_v60, %v618_v17  ;;  %v635_v20 = vmul.f32 %v629_v61, %v616_v16  ;;  %799 = vmatprep.subr.bf16.mxu1 %v603_v43  ;;  %v703_v40 = vmul.f32 %v699_v35, %v687_v50 }
 0x1db   : > { %800 = vmatpush1.bf16.msra.mxu1 %v602_v13 }
 0x1dc   : > { %v647_v26 = vpop.permute.xlu1 %646  ;;  %v637_v27 = vpack.c.bf16 %v635_v20, %v633_v18  ;;  %v636_v28 = vpack.c.bf16 %v634_v19, %v632_v39  ;;  %v711_v32 = vpop.permute.xlu0 %710 }
 0x1dd   : > { %v650_v47 = vsel %vm648_vm7, %v1591_v52, %v647_v26  ;;  %v652_v29 = vsel %vm648_vm7, %v647_v26, %v1591_v52  ;;  %v685_v52 = vsel %vm684_vm8, %v1596_v58, %v681_v11  ;;  %v1193_v26 = vld [vmem:[%s1771_s6] sm:$0xff]  }
 0x1de   : > { %v668_v33 = vmul.f32 %v659_v14, %v652_v29  ;;  %v669_v34 = vmul.f32 %v663_v15, %v650_v47  ;;  %801 = vmatprep.subr.bf16.mxu1 %v637_v27  ;;  %v702_v58 = vmul.f32 %v695_v44, %v685_v52 }
 0x1df   : > { %802 = vmatpush1.bf16.msra.mxu1 %v636_v28 }
 0x1e0   : > { %v713_v42 = vpop.permute.xlu1 %712  ;;  %v671_v38 = vpack.c.bf16 %v669_v34, %v667_v31  ;;  %v670_v41 = vpack.c.bf16 %v668_v33, %v666_v30  ;;  %v715_v51 = vpop.permute.xlu0 %714 }
 0x1e1   : > { %v719_v61 = vsel %vm718_vm9, %v711_v32, %v715_v51 }
 0x1e2   : > { %803 = vmatprep.subr.bf16.mxu1 %v671_v38  ;;  %v736_v63 = vmul.f32 %v729_v54, %v719_v61 }
 0x1e3   : > { %804 = vmatpush1.bf16.msra.mxu1 %v670_v41 }
 0x1e4   : > { %v683_v53 = vpop.permute.xlu1 %682  ;;  %805 = vmatprep.subr.bf16.mxu1 %v1545_v25  ;;  %v721_v25 = vsel %vm718_vm9, %v715_v51, %v711_v32 }
 0x1e5   : > { %v686_v56 = vsel %vm684_vm8, %v1609_v23, %v683_v53  ;;  %v688_v57 = vsel %vm684_vm8, %v683_v53, %v1609_v23  ;;  %v737_v4 = vmul.f32 %v733_v55, %v721_v25 }
 0x1e6   : > { %v704_v59 = vmul.f32 %v695_v44, %v686_v56  ;;  %v705_v60 = vmul.f32 %v699_v35, %v688_v57 }
 0x1e7   : > { %806 = vmatpush1.bf16.msra.mxu1 %v1543_v24  ;;  %v1190_v24 = vld [vmem:[%s1769_s4] ss:$8 sps:$4 sm:$0xff]  }
 0x1e8   : > { %v717_v48 = vpop.permute.xlu1 %716  ;;  %v707_v49 = vpack.c.bf16 %v705_v60, %v703_v40  ;;  %v706_v62 = vpack.c.bf16 %v704_v59, %v702_v58 }
 0x1e9   : > { %v720_v37 = vsel %vm718_vm9, %v713_v42, %v717_v48  ;;  %v722_v23 = vsel %vm718_vm9, %v717_v48, %v713_v42 }
 0x1ea   : > { %v738_v6 = vmul.f32 %v729_v54, %v720_v37  ;;  %v739_v7 = vmul.f32 %v733_v55, %v722_v23  ;;  %807 = vmatprep.subr.bf16.mxu1 %v707_v49 }
 0x1eb   : > { %808 = vmatpush1.bf16.msra.mxu1 %v706_v62 }
 0x1ec   : > { %v741_v8 = vpack.c.bf16 %v739_v7, %v737_v4  ;;  %v740_v9 = vpack.c.bf16 %v738_v6, %v736_v63 }
 0x1ee   : > { %809 = vmatprep.subr.bf16.mxu1 %v741_v8 }
 0x1ef   : > { %810 = vmatpush1.bf16.msra.mxu1 %v740_v9 }
 0x1f1   : > { %v771_v10 = vpop.permute.xlu0 %770 }
 0x1f2   : > { %824 = vmatmul.mubr.bf16.vlgmr.msra.gmra.mrb[0].mxu1 %v1190_v24 }
 0x1f5   : > { %v847_v27 = vpop.permute.xlu0 %846 }
 0x1f9   : > { %v776_v43 = vpop.permute.xlu1 %775  ;;  %v918_v52 = vpop.permute.xlu0 %917 }
 0x1fd   : > { %v852_v30 = vpop.permute.xlu1 %851 }
 0x201   : > { %v923_v54 = vpop.permute.xlu1 %922 }
 0x2c5   : > { %v825_v11 = vpop.f32.mrb[0].mxu1 }
 0x2c6   : > { %v826_v12 = vadd.f32 %v825_v11, %v771_v10  ;;  %v827_v45 = vpop.f32.mrb[1].mxu1 }
 0x2c7   : > { %v828_v13 = vadd.f32 %v827_v45, %v771_v10  ;;  %v829_v14 = vpop.f32.mrb[2].mxu1 }
 0x2c8   : > { %v830_v15 = vadd.f32 %v829_v14, %v776_v43  ;;  %v831_v16 = vpop.f32.mrb[3].mxu1  ;;  %v834_v39 = vmax.f32 %v826_v12, 0.0 }
 0x2c9   : > { %v832_v17 = vadd.f32 %v831_v16, %v776_v43  ;;  %v835_v19 = vmax.f32 %v828_v13, 0.0 }
 0x2ca   : > { %v836_v18 = vmax.f32 %v830_v15, 0.0 }
 0x2cb   : > { %v837_v20 = vmax.f32 %v832_v17, 0.0 }
 0x2cc   : > { %v838_v21 = vpack.c.bf16 %v836_v18, %v834_v39 }
 0x2cd   : > { %v839_v22 = vpack.c.bf16 %v837_v20, %v835_v19 }
 0x2cf   : > { %862 = vmatprep.subr.bf16.mxu0 %v839_v22 }
 0x2d0   : > { %863 = vmatpush1.bf16.msra.mxu0 %v838_v21 }
 0x2d3   : > { %1103 = vmatmul.mubr.msk.bf16.vlgmr.msra.gmra.mrb[4].mxu0 %vm414_vm0, %v1193_v26 }
 0x2d4   : > { %965 = vmatprep.mubr.bf16.mxu0 %v1329_v0  ;;  %v1194_v0 = vld [vmem:[%s1773_s8] sm:$0xff]  }
 0x3a6   : > { %v896_v28 = vpop.f32.mrb[4].mxu0 }
 0x3a7   : > { %v897_v47 = vadd.f32 %v896_v28, %v847_v27  ;;  %v898_v29 = vpop.f32.mrb[5].mxu0 }
 0x3a8   : > { %v899_v31 = vadd.f32 %v898_v29, %v847_v27  ;;  %v900_v32 = vpop.f32.mrb[6].mxu0 }
 0x3a9   : > { %v901_v33 = vadd.f32 %v900_v32, %v852_v30  ;;  %v902_v34 = vpop.f32.mrb[7].mxu0  ;;  %v905_v42 = vmax.f32 %v897_v47, 0.0 }
 0x3aa   : > { %v903_v36 = vadd.f32 %v902_v34, %v852_v30  ;;  %v906_v41 = vmax.f32 %v899_v31, 0.0 }
 0x3ab   : > { %v907_v38 = vmax.f32 %v901_v33, 0.0 }
 0x3ac   : > { %v908_v44 = vmax.f32 %v903_v36, 0.0 }
 0x3ad   : > { %v909_v35 = vpack.c.bf16 %v907_v38, %v905_v42 }
 0x3ae   : > { %v910_v46 = vpack.c.bf16 %v908_v44, %v906_v41 }
 0x3b0   : > { %933 = vmatprep.subr.bf16.mxu0 %v910_v46 }
 0x3b1   : > { %934 = vmatpush1.bf16.msra.mxu0 %v909_v35 }
 0x3b4   : > { %1105 = vmatmul.mubr.msk.bf16.vlgmr.msra.gmra.mrb[8].mxu0 %vm414_vm0, %v1194_v0 }
 0x487   : > { %v967_v50 = vpop.f32.mrb[8].mxu0 }
 0x488   : > { %v968_v51 = vadd.f32 %v967_v50, %v918_v52  ;;  %v969_v53 = vpop.f32.mrb[9].mxu0 }
 0x489   : > { %v970_v55 = vadd.f32 %v969_v53, %v918_v52  ;;  %v971_v56 = vpop.f32.mrb[10].mxu0 }
 0x48a   : > { %v976_v57 = vmax.f32 %v968_v51, 0.0  ;;  %v972_v58 = vadd.f32 %v971_v56, %v923_v54  ;;  %v973_v40 = vpop.f32.mrb[11].mxu0 }
 0x48b   : > { %v977_v59 = vmax.f32 %v970_v55, 0.0  ;;  %v974_v60 = vadd.f32 %v973_v40, %v923_v54 }
 0x48c   : > { %v980_v61 = vadd.f32 %v976_v57, %v1527_v3  ;;  %v978_v25 = vmax.f32 %v972_v58, 0.0 }
 0x48d   : > { %v981_v48 = vadd.f32 %v977_v59, %v1523_v1  ;;  %v979_v49 = vmax.f32 %v974_v60, 0.0 }
 0x48e   : > { %984 = vst [vmem:[%s382_s27] sm:$0xff] %v980_v61  ;;  %v982_v62 = vadd.f32 %v978_v25, %v1531_v5 }
 0x48f   : > { %985 = vst [vmem:[%s382_s27 + $0x8] sm:$0xff] %v981_v48  ;;  %v983_v37 = vadd.f32 %v979_v49, %v1525_v2 }
 0x490   : > { %986 = vst [vmem:[%s382_s27 + $0x10] sm:$0xff] %v982_v62 }
 0x491   : > { %987 = vst [vmem:[%s382_s27 + $0x18] sm:$0xff] %v983_v37 }
 0x492   : > { %1264 = shalt.err (!%p1261_p11)
}
 0x493   : > { %s1265_s20 = scalar_lea.hbm %s1721_s30, 512  ;;  %s1269_s29 = scalar_lea.hbm %s1775_s10, 1024 }
 0x494   : > { %p1266_p13 = scmp.ne.s32.totalorder %s1721_s30, %s1265_s20  ;;  %p1270_p6 = scmp.lt.u32.totalorder %s1721_s30, %s1775_s10 }
 0x495   : > { %p1271_p9 = scmp.lt.u32.totalorder %s1269_s29, %s1265_s20  ;;  %p1273_p12 = scmp.lt.u32.totalorder %s1265_s20, %s1721_s30 }
 0x496   : > { %p1267_p0 = pnand %p1266_p13, %p1796_p1 }
 0x497   : > { %p1272_p10 = por %p1271_p9, %p1270_p6 }
 0x498   : > { %p1268_p5 = pneg %p1267_p0 }
 0x499   : > { %p1274_p2 = por %p1273_p12, %p1272_p10 }
 0x49b   : > { %p1275_p3 = pnand %p1274_p2, %p1268_p5 }
 0x49d   : > { %1278 = shalt.err (!%p1275_p3)
}
 0x49e   : > { %s1339_s24 = smov 256  }
 0x49f   : > { %1121 = dma.vmem_to_hbm [thread:$0]  (%p1796_p1), %s1714_s15, 512, %s1721_s30, %s1723_s17, %s1339_s24, %s1339_s24, %s1335_s11  }
 0x4a0 PF: > { %s1797_s25 = sld [smem:[#allocation15_spill]]  ;;  %p1138_p4 = scmp.ge.s32.totalorder %s1321_s16, 2 }
 0x4a1   : > { %s1017_s28 = sand.u32 1, %s1309_s13  }
 0x4a2   : > { %s1018_s12 = scalar_lea.sflag [#allocation5], %s1017_s28 }
 0x4a6   : > { %p1798_p7 = scmp.ne.s32.totalorder %s1797_s25, 0 }
 0x4a8   : > { %p1131_p8 = pnand %p1138_p4, %p1798_p7 }
 0x4aa   : > { %1304 = dma.done.wait (!%p1131_p8), %s1018_s12, 512  }
 0x4ab   : > { %1306 = vsyncadd (!%p1131_p8), %s1018_s12, 4294966784  ;;  %s1799_s16 = sld [smem:[#allocation13_spill]]  ;;  %s1800_s22 = sld [smem:[#allocation12_spill]] }
 0x4ac   : > { %s1801_s15 = sld [smem:[#allocation14_spill]]  ;;  %s1802_s13 = smov %s1313_s14 }
 0x4b1   : > { %p22_p11 = scmp.ge.s32.totalorder %s1799_s16, 4   ;;  %s1803_s14 = smov %s1800_s22 }
 0x4b3   :  { %24 = sbr.rel (!%p22_p11) target bundleno = 5 (0x5), region = 111 }
 0x4ba   :  { %1023 = vsyncpa [#allocation4], 1 }
 0x4bb   :  { %1025 = vsyncpa [#allocation4 + $0x1], 1 }
 0x4bc   :  { %1026 = vsyncpa [#allocation7], 1 }
 0x4bd   :  { %1027 = vsyncpa [#allocation5], 1 }
 0x4be   :  { %1029 = vsyncpa [#allocation5 + $0x1], 1 }

</bundles_post_ra>
